<compile_context>
chip_gen: v7x
topology: tpu7x:2x2x1
jax: 0.10.0
libtpu: 0.0.40
codegen_flags: <defaults>
</compile_context>

<pallas_src>
import functools
import math

import jax
import jax.numpy as jnp
from jax import lax
from jax.experimental import pallas as pl
from jax.experimental.pallas import tpu as pltpu


# ---------------------------------------------------------------------------
# Tiled linear kernel:  y = x @ w_t + b   (w_t already (Cin, Cout))
# ---------------------------------------------------------------------------
def _linear_kernel(x_ref, w_ref, b_ref, o_ref, acc_ref):
    k = pl.program_id(2)

    @pl.when(k == 0)
    def _():
        acc_ref[...] = jnp.zeros_like(acc_ref)

    acc_ref[...] += jnp.dot(x_ref[...], w_ref[...],
                            preferred_element_type=jnp.float32)

    @pl.when(k == pl.num_programs(2) - 1)
    def _():
        o_ref[...] = (acc_ref[...] + b_ref[...].astype(jnp.float32)
                      ).astype(o_ref.dtype)


def _pick_tile(dim, cap):
    """Largest multiple of 128 <= cap that divides dim, else the full dim."""
    if dim <= cap:
        return dim
    t = cap
    while t >= 128:
        if dim % t == 0:
            return t
        t -= 128
    # TODO(synk): falls back to one giant block for awkward dims; fine for the
    # shapes exercised here but could exceed VMEM for very large inputs.
    return dim


def linear(x2d, w_t, b, out_dtype, *, tm_cap=512, tn_cap=1024, tk_cap=1024):
    """x2d: (M, Cin), w_t: (Cin, Cout) pre-transposed, b: (Cout,) f32."""
    M, Cin = x2d.shape
    Cout = w_t.shape[1]
    tm = _pick_tile(M, tm_cap)
    tn = _pick_tile(Cout, tn_cap)
    tk = _pick_tile(Cin, tk_cap)
    grid = (M // tm, Cout // tn, Cin // tk)
    b2 = b.reshape(1, Cout)
    return pl.pallas_call(
        _linear_kernel,
        out_shape=jax.ShapeDtypeStruct((M, Cout), out_dtype),
        grid_spec=pltpu.PrefetchScalarGridSpec(
            num_scalar_prefetch=0,
            grid=grid,
            in_specs=[
                pl.BlockSpec((tm, tk), lambda i, j, k: (i, k)),
                pl.BlockSpec((tk, tn), lambda i, j, k: (k, j)),
                pl.BlockSpec((1, tn), lambda i, j, k: (0, j)),
            ],
            out_specs=pl.BlockSpec((tm, tn), lambda i, j, k: (i, j)),
            scratch_shapes=[pltpu.VMEM((tm, tn), jnp.float32)],
        ),
        compiler_params=pltpu.CompilerParams(
            dimension_semantics=("parallel", "parallel", "arbitrary"),
            # Explicit scoped-VMEM budget: fits v5e's 16MiB-default override,
            # v6e's 128MiB and v7x's 64MiB physical VMEM alike.
            vmem_limit_bytes=32 * 1024 * 1024),
    )(x2d, w_t, b2)


# ---------------------------------------------------------------------------
# Flash-attention kernel over head groups, data stays in (B, T, C) layout.
# ---------------------------------------------------------------------------
def _cols_to_group(cols_list, tq, d_head):
    """Broadcast each (tq,1) column over d_head lanes and concat -> (tq, hsub*Dh)."""
    slabs = [jnp.broadcast_to(c, (tq, d_head)) for c in cols_list]
    return slabs[0] if len(slabs) == 1 else jnp.concatenate(slabs, axis=1)


def _flash_attn_kernel(q_ref, k_ref, v_ref, o_ref, m_ref, l_ref, acc_ref, *,
                       is_causal, hsub, d_head, tq, tkv):
    kvi = pl.program_id(3)
    q_start = pl.program_id(2) * tq
    kv_start = kvi * tkv

    @pl.when(kvi == 0)
    def _():
        m_ref[...] = jnp.full(m_ref.shape, -jnp.inf, m_ref.dtype)
        l_ref[...] = jnp.zeros_like(l_ref)
        acc_ref[...] = jnp.zeros_like(acc_ref)

    def _tile_update(masked):
        if masked:
            row = q_start + lax.broadcasted_iota(jnp.int32, (tq, tkv), 0)
            col = kv_start + lax.broadcasted_iota(jnp.int32, (tq, tkv), 1)
            keep = col <= row
        m_prev = m_ref[...]                       # (tq, hsub) f32
        l_prev = l_ref[...]
        m_cols, l_cols, a_cols, pv_slabs = [], [], [], []
        for h in range(hsub):                     # small static unroll
            sl = slice(h * d_head, (h + 1) * d_head)
            # Always bf16 MXU operands; f32 accumulation / softmax statistics.
            qh = q_ref[0, :, sl].astype(jnp.bfloat16)   # (tq,  Dh)
            kh = k_ref[0, :, sl].astype(jnp.bfloat16)   # (tkv, Dh)
            vh = v_ref[0, :, sl].astype(jnp.bfloat16)   # (tkv, Dh)
            # QK^T without a physical transpose (contract last dims on MXU).
            # NOTE: the 1/sqrt(Dh) scale is already folded into w_q / b_q.
            s = lax.dot_general(qh, kh, (((1,), (1,)), ((), ())),
                                preferred_element_type=jnp.float32)
            if masked:
                s = jnp.where(keep, s, jnp.float32(-1e30))
            m_h_prev = m_prev[:, h:h + 1]                       # (tq, 1)
            m_h = jnp.maximum(m_h_prev, jnp.max(s, axis=-1, keepdims=True))
            alpha = jnp.exp(m_h_prev - m_h)
            p = jnp.exp(s - m_h)
            l_cols.append(alpha * l_prev[:, h:h + 1]
                          + jnp.sum(p, axis=-1, keepdims=True))
            m_cols.append(m_h)
            a_cols.append(alpha)
            pv_slabs.append(jnp.dot(p.astype(jnp.bfloat16), vh,
                                    preferred_element_type=jnp.float32))
        # Single full-width scratch stores per KV step (no sub-128-lane RMW
        # on acc; m/l are written once at width hsub instead of hsub times).
        m_ref[...] = m_cols[0] if hsub == 1 else jnp.concatenate(m_cols, axis=1)
        l_ref[...] = l_cols[0] if hsub == 1 else jnp.concatenate(l_cols, axis=1)
        alpha_full = _cols_to_group(a_cols, tq, d_head)          # (tq, G)
        pv_full = (pv_slabs[0] if hsub == 1
                   else jnp.concatenate(pv_slabs, axis=1))       # (tq, G)
        acc_ref[...] = alpha_full * acc_ref[...] + pv_full

    if is_causal:
        # Interior tiles (fully below the diagonal) skip all mask math; only
        # diagonal-straddling tiles pay the iota/compare/select.  Tiles fully
        # above the diagonal do no compute, and their K/V DMA is aliased to the
        # last needed block by the index_map clamp (no wasted HBM traffic).
        below = kv_start + tkv - 1 <= q_start
        on_diag = jnp.logical_and(kv_start <= q_start + tq - 1,
                                  kv_start + tkv - 1 > q_start)

        @pl.when(below)
        def _():
            _tile_update(masked=False)

        @pl.when(on_diag)
        def _():
            _tile_update(masked=True)
        # TODO(synk): skipped tiles still cost one grid step (~0.35us); a 1-D
        # lower-triangular grid via scalar prefetch would remove them entirely.
    else:
        _tile_update(masked=False)

    @pl.when(kvi == pl.num_programs(3) - 1)
    def _():
        inv = pl.reciprocal(l_ref[...], approx=True)             # EUP slot
        inv_full = _cols_to_group([inv[:, h:h + 1] for h in range(hsub)],
                                  tq, d_head)
        # One lane-dense store of the whole (tq, G) slab in (B,T,C) layout.
        o_ref[0] = (acc_ref[...] * inv_full).astype(o_ref.dtype)


def _pick_head_group(n_head, d_head, max_unroll=8):
    """Smallest head group (<= max_unroll) whose lane width is a multiple of
    128; otherwise fall back to all heads (full-C blocks satisfy the layout
    rule)."""
    for hs in range(1, n_head + 1):
        if n_head % hs == 0 and hs <= max_unroll and (hs * d_head) % 128 == 0:
            return hs
    # TODO(synk): for very large n_head with misaligned d_head this unrolls all
    # heads; a lax.fori_loop over pl.ds lane slices would bound code size.
    return n_head


def _pick_seq_tile(dim, cap):
    if dim <= cap:
        return dim
    t = cap
    while t > 8 and dim % t != 0:
        t //= 2
    return t if dim % t == 0 else dim


def flash_attention(q, k, v, n_head, d_model, is_causal, *,
                    q_col_off=0, k_col_off=0, v_col_off=0,
                    tq_cap=512, tkv_cap=512):
    """q: (B, Tq, >=C), k/v: (B, Tkv, >=C) -> (B, Tq, C).

    q/k/v may be wider arrays (e.g. the fused (B, T, 3C) QKV activation); the
    *_col_off arguments pick which channel range belongs to Q, K and V."""
    B, Tq, _ = q.shape
    Tkv = k.shape[1]
    d_head = d_model // n_head
    hsub = _pick_head_group(n_head, d_head)
    G = hsub * d_head                      # lane width per grid step
    assert q_col_off % G == 0 and k_col_off % G == 0 and v_col_off % G == 0
    qg, kg, vg = q_col_off // G, k_col_off // G, v_col_off // G
    tq = _pick_seq_tile(Tq, tq_cap)
    tkv = _pick_seq_tile(Tkv, tkv_cap)
    grid = (B, n_head // hsub, Tq // tq, Tkv // tkv)

    def q_map(b, g, qi, kvi):
        return (b, qi, qg + g)

    def make_kv_map(goff):
        def _map(b, g, qi, kvi):
            if is_causal:
                # Clamp: tiles fully above the causal diagonal alias the last
                # needed block and are never re-DMA'd.
                kvi = jnp.minimum(kvi, ((qi + 1) * tq - 1) // tkv)
            return (b, kvi, goff + g)
        return _map

    kernel = functools.partial(
        _flash_attn_kernel, is_causal=is_causal,
        hsub=hsub, d_head=d_head, tq=tq, tkv=tkv)

    # TODO(synk): try pipeline_mode=pl.Buffered(3) on K/V if a trace shows
    # exposed DMA on the kvi axis at these tile sizes.
    return pl.pallas_call(
        kernel,
        out_shape=jax.ShapeDtypeStruct((B, Tq, d_model), q.dtype),
        grid_spec=pltpu.PrefetchScalarGridSpec(
            num_scalar_prefetch=0,
            grid=grid,
            in_specs=[
                pl.BlockSpec((1, tq, G), q_map),
                pl.BlockSpec((1, tkv, G), make_kv_map(kg)),
                pl.BlockSpec((1, tkv, G), make_kv_map(vg)),
            ],
            out_specs=pl.BlockSpec((1, tq, G), lambda b, g, qi, kvi: (b, qi, g)),
            scratch_shapes=[
                pltpu.VMEM((tq, hsub), jnp.float32),   # running max  m
                pltpu.VMEM((tq, hsub), jnp.float32),   # running sum  l
                pltpu.VMEM((tq, G), jnp.float32),      # running acc (f32)
            ],
        ),
        compiler_params=pltpu.CompilerParams(
            dimension_semantics=("parallel", "parallel", "parallel",
                                 "arbitrary"),
            vmem_limit_bytes=32 * 1024 * 1024),
    )(q, k, v)


# ---------------------------------------------------------------------------
# Parameters (nn.Linear-shaped init) + one-time prep (scale-fold / transpose /
# fuse / cast)
# ---------------------------------------------------------------------------
def init_mha_params(key, token_embed_dim, d_model):
    ks = jax.random.split(key, 8)

    def lin(kw, kb, fan_in, fan_out):
        bound = 1.0 / (fan_in ** 0.5)
        w = jax.random.uniform(kw, (fan_out, fan_in), jnp.float32, -bound, bound)
        b = jax.random.uniform(kb, (fan_out,), jnp.float32, -bound, bound)
        return w, b

    params = {}
    params["wq"], params["bq"] = lin(ks[0], ks[1], token_embed_dim, d_model)
    params["wk"], params["bk"] = lin(ks[2], ks[3], token_embed_dim, d_model)
    params["wv"], params["bv"] = lin(ks[4], ks[5], token_embed_dim, d_model)
    params["wo"], params["bo"] = lin(ks[6], ks[7], d_model, d_model)
    return params


def prepare_mha_params(raw, n_head, compute_dtype):
    """Fold 1/sqrt(Dh) into w_q/b_q, pre-transpose (Cout,Cin)->(Cin,Cout),
    fuse QKV, cast weights once."""
    cd = compute_dtype
    d_model = raw["wq"].shape[0]
    scale = 1.0 / math.sqrt(d_model // n_head)
    p = {}
    p["w_q_t"] = (raw["wq"] * scale).T.astype(cd)
    p["w_k_t"] = raw["wk"].T.astype(cd)
    p["w_v_t"] = raw["wv"].T.astype(cd)
    p["w_o_t"] = raw["wo"].T.astype(cd)
    p["w_qkv_t"] = jnp.concatenate([p["w_q_t"], p["w_k_t"], p["w_v_t"]], axis=1)
    p["b_q"] = (raw["bq"] * scale).astype(jnp.float32)
    p["b_k"] = raw["bk"].astype(jnp.float32)
    p["b_v"] = raw["bv"].astype(jnp.float32)
    p["b_o"] = raw["bo"].astype(jnp.float32)
    p["b_qkv"] = jnp.concatenate([p["b_q"], p["b_k"], p["b_v"]])
    return p


# ---------------------------------------------------------------------------
# Forward pass (matches MultiHeadAttention.forward semantics)
# ---------------------------------------------------------------------------
def multi_head_attention(params, queries, keys, values, n_head,
                         is_causal=False, compute_dtype=jnp.bfloat16,
                         out_dtype=jnp.float32,
                         attn_tq_cap=512, attn_tkv_cap=512):
    B, T, C = queries.shape
    assert C % n_head == 0
    d_head = C // n_head
    cd = compute_dtype

    if (keys is queries) and (values is queries):
        # Self-attention: fused QKV projection -> activations read from HBM once.
        xq = queries.reshape(B * T, C).astype(cd)
        qkv = linear(xq, params["w_qkv_t"], params["b_qkv"], cd)   # (B*T, 3C)
        hsub = _pick_head_group(n_head, d_head)
        if (hsub * d_head) % 128 == 0:
            # Lane-aligned head groups: feed attention straight from the fused
            # (B, T, 3C) activation via BlockSpec column offsets (no slices).
            qkv3 = qkv.reshape(B, T, 3 * C)
            attn = flash_attention(qkv3, qkv3, qkv3, n_head, C, is_causal,
                                   q_col_off=0, k_col_off=C, v_col_off=2 * C,
                                   tq_cap=attn_tq_cap, tkv_cap=attn_tkv_cap)
        else:
            # Narrow head groups: a G-wide block of a (B, T, 3C) array would
            # violate the (8,128)/full-extent lane rule, so slice instead.
            q3 = qkv[:, :C].reshape(B, T, C)
            k3 = qkv[:, C:2 * C].reshape(B, T, C)
            v3 = qkv[:, 2 * C:].reshape(B, T, C)
            attn = flash_attention(q3, k3, v3, n_head, C, is_causal,
                                   tq_cap=attn_tq_cap, tkv_cap=attn_tkv_cap)
    else:
        S = keys.shape[1]                       # K/V may have their own length
        xq = queries.reshape(B * T, C).astype(cd)
        xk = keys.reshape(B * S, C).astype(cd)
        xv = values.reshape(B * S, C).astype(cd)
        q3 = linear(xq, params["w_q_t"], params["b_q"], cd).reshape(B, T, C)
        k3 = linear(xk, params["w_k_t"], params["b_k"], cd).reshape(B, S, C)
        v3 = linear(xv, params["w_v_t"], params["b_v"], cd).reshape(B, S, C)
        attn = flash_attention(q3, k3, v3, n_head, C, is_causal,
                               tq_cap=attn_tq_cap, tkv_cap=attn_tkv_cap)

    out = linear(attn.reshape(B * T, C), params["w_o_t"], params["b_o"],
                 out_dtype)                                        # concat_linear
    return out.reshape(B, T, C)


# ---------------------------------------------------------------------------
# Pure-JAX reference for the sanity check
# ---------------------------------------------------------------------------
def reference_mha(raw, queries, keys, values, n_head, is_causal=False):
    B, T, C = queries.shape
    Dh = C // n_head

    def proj(x, w, b):
        y = x @ w.T + b
        return y.reshape(B, -1, n_head, Dh).transpose(0, 2, 1, 3)

    q = proj(queries, raw["wq"], raw["bq"])
    k = proj(keys, raw["wk"], raw["bk"])
    v = proj(values, raw["wv"], raw["bv"])
    s = jnp.einsum("bhtd,bhsd->bhts", q, k) / (Dh ** 0.5)
    if is_causal:
        Tq, Tk = s.shape[-2], s.shape[-1]
        mask = jnp.tril(jnp.ones((Tq, Tk), bool))
        s = jnp.where(mask, s, -1e30)
    p = jax.nn.softmax(s, axis=-1)
    o = jnp.einsum("bhts,bhsd->bhtd", p, v)
    o = o.transpose(0, 2, 1, 3).reshape(B, T, C)
    return o @ raw["wo"].T + raw["bo"]


if __name__ == "__main__":
    key = jax.random.PRNGKey(0)
    k0, kq, kk, kv, k1, kx = jax.random.split(key, 6)

    # --- Config 1: tiny shapes, narrow heads (sliced-QKV fallback path) ------
    B, T, C, n_head = 2, 8, 32, 4
    raw = init_mha_params(k0, token_embed_dim=C, d_model=C)
    params = prepare_mha_params(raw, n_head, jnp.bfloat16)
    queries = jax.random.normal(kq, (B, T, C), jnp.float32)
    keys = jax.random.normal(kk, (B, T, C), jnp.float32)
    values = jax.random.normal(kv, (B, T, C), jnp.float32)

    # cross-attention (distinct q/k/v), non-causal
    out = multi_head_attention(params, queries, keys, values, n_head,
                               is_causal=False)
    out = jax.block_until_ready(out)
    ref = reference_mha(raw, queries, keys, values, n_head, False)
    assert out.shape == (B, T, C)
    assert jnp.allclose(out, ref, atol=5e-2, rtol=5e-2), \
        float(jnp.max(jnp.abs(out - ref)))

    # self-attention (fused QKV projection), causal
    out_sa = multi_head_attention(params, queries, queries, queries, n_head,
                                  is_causal=True)
    out_sa = jax.block_until_ready(out_sa)
    ref_sa = reference_mha(raw, queries, queries, queries, n_head, True)
    assert jnp.allclose(out_sa, ref_sa, atol=5e-2, rtol=5e-2), \
        float(jnp.max(jnp.abs(out_sa - ref_sa)))

    # --- Config 2: lane-aligned heads -> fused (B,T,3C) attention feed,
    #     small seq tiles to exercise interior / diagonal / skipped causal tiles
    B2, T2, C2, n_head2 = 2, 16, 256, 2        # d_head = 128, hsub = 1, G = 128
    raw2 = init_mha_params(k1, token_embed_dim=C2, d_model=C2)
    params2 = prepare_mha_params(raw2, n_head2, jnp.bfloat16)
    x2 = jax.random.normal(kx, (B2, T2, C2), jnp.float32)
    out2 = multi_head_attention(params2, x2, x2, x2, n_head2, is_causal=True,
                                attn_tq_cap=8, attn_tkv_cap=8)
    out2 = jax.block_until_ready(out2)
    ref2 = reference_mha(raw2, x2, x2, x2, n_head2, True)
    assert jnp.allclose(out2, ref2, atol=5e-2, rtol=5e-2), \
        float(jnp.max(jnp.abs(out2 - ref2)))

    print("KERNEL_OK")
</pallas_src>

<mosaic_0001>
module attributes {stable_mosaic.version = 11 : i64} {
  func.func @_linear_kernel(%arg0: i32, %arg1: i32, %arg2: i32, %arg3: memref<16x32xbf16, #tpu.memory_space<vmem>>, %arg4: memref<32x32xbf16, #tpu.memory_space<vmem>>, %arg5: memref<1x32xf32, #tpu.memory_space<vmem>>, %arg6: memref<16x32xbf16, #tpu.memory_space<vmem>>, %arg7: memref<16x32xf32, #tpu.memory_space<vmem>>) attributes {dimension_semantics = [#tpu.dimension_semantics<parallel>, #tpu.dimension_semantics<parallel>, #tpu.dimension_semantics<arbitrary>], iteration_bounds = array<i64: 1, 1, 1>, scalar_prefetch = 0 : i64, scratch_operands = 1 : i64, tpu.core_type = #tpu.core_type<tc>, window_params = [{transform_indices = @transform_0, window_bounds = array<i64: 16, 32>}, {transform_indices = @transform_1, window_bounds = array<i64: 32, 32>}, {transform_indices = @transform_2, window_bounds = array<i64: 1, 32>}, {transform_indices = @transform_3, window_bounds = array<i64: 16, 32>}]} {
    %c0_i32 = arith.constant 0 : i32
    %0 = arith.cmpi eq, %arg2, %c0_i32 : i32
    %1 = arith.extui %0 : i1 to i32
    %c0_i32_0 = arith.constant 0 : i32
    %2 = arith.cmpi ne, %1, %c0_i32_0 : i32
    scf.if %2 {
      %cst_10 = arith.constant 0.000000e+00 : f32
      %12 = vector.broadcast %cst_10 : f32 to vector<16x32xf32>
      %c0_11 = arith.constant 0 : index
      %c0_12 = arith.constant 0 : index
      %13 = vector.load %arg7[%c0_11, %c0_12] : memref<16x32xf32, #tpu.memory_space<vmem>>, vector<16x32xf32>
      tpu.vector_store %arg7[%c0_11, %c0_12], %12 {strides = array<i32>} : memref<16x32xf32, #tpu.memory_space<vmem>>, vector<16x32xf32>,
    } else {
    }
    %c0 = arith.constant 0 : index
    %c0_1 = arith.constant 0 : index
    %3 = vector.load %arg7[%c0, %c0_1] : memref<16x32xf32, #tpu.memory_space<vmem>>, vector<16x32xf32>
    %c0_2 = arith.constant 0 : index
    %c0_3 = arith.constant 0 : index
    %4 = vector.load %arg3[%c0_2, %c0_3] : memref<16x32xbf16, #tpu.memory_space<vmem>>, vector<16x32xbf16>
    %c0_4 = arith.constant 0 : index
    %c0_5 = arith.constant 0 : index
    %5 = vector.load %arg4[%c0_4, %c0_5] : memref<32x32xbf16, #tpu.memory_space<vmem>>, vector<32x32xbf16>
    %cst = arith.constant dense<0.000000e+00> : vector<16x32xf32>
    %6 = tpu.matmul %4, %5, %cst {dimension_numbers = #tpu.dot_dimension_numbers<[1], [0], [0], [1], [0, 0, 1, 1], [], []>} : vector<16x32xbf16>, vector<32x32xbf16>, vector<16x32xf32> -> vector<16x32xf32>
    %7 = arith.addf %3, %6 : vector<16x32xf32>
    %c0_6 = arith.constant 0 : index
    %c0_7 = arith.constant 0 : index
    %8 = vector.load %arg7[%c0_6, %c0_7] : memref<16x32xf32, #tpu.memory_space<vmem>>, vector<16x32xf32>
    tpu.vector_store %arg7[%c0_6, %c0_7], %7 {strides = array<i32>} : memref<16x32xf32, #tpu.memory_space<vmem>>, vector<16x32xf32>,
    %c0_i32_8 = arith.constant 0 : i32
    %9 = arith.cmpi eq, %arg2, %c0_i32_8 : i32
    %10 = arith.extui %9 : i1 to i32
    %c0_i32_9 = arith.constant 0 : i32
    %11 = arith.cmpi ne, %10, %c0_i32_9 : i32
    scf.if %11 {
      %c0_10 = arith.constant 0 : index
      %c0_11 = arith.constant 0 : index
      %12 = vector.load %arg7[%c0_10, %c0_11] : memref<16x32xf32, #tpu.memory_space<vmem>>, vector<16x32xf32>
      %c0_12 = arith.constant 0 : index
      %c0_13 = arith.constant 0 : index
      %13 = vector.load %arg5[%c0_12, %c0_13] : memref<1x32xf32, #tpu.memory_space<vmem>>, vector<1x32xf32>
      %14 = vector.broadcast %13 : vector<1x32xf32> to vector<16x32xf32>
      %15 = arith.addf %12, %14 : vector<16x32xf32>
      %16 = arith.truncf %15 : vector<16x32xf32> to vector<16x32xbf16>
      %c0_14 = arith.constant 0 : index
      %c0_15 = arith.constant 0 : index
      %17 = vector.load %arg6[%c0_14, %c0_15] : memref<16x32xbf16, #tpu.memory_space<vmem>>, vector<16x32xbf16>
      tpu.vector_store %arg6[%c0_14, %c0_15], %16 {strides = array<i32>} : memref<16x32xbf16, #tpu.memory_space<vmem>>, vector<16x32xbf16>,
    } else {
    }
    return
  }
  func.func @transform_0(%arg0: i32, %arg1: i32, %arg2: i32) -> (i32, i32) {
    %c0_i32 = arith.constant 0 : i32
    return %arg0, %arg2 : i32, i32
  }
  func.func @transform_1(%arg0: i32, %arg1: i32, %arg2: i32) -> (i32, i32) {
    %c0_i32 = arith.constant 0 : i32
    return %arg2, %arg1 : i32, i32
  }
  func.func @transform_2(%arg0: i32, %arg1: i32, %arg2: i32) -> (i32, i32) {
    %c0_i32 = arith.constant 0 : i32
    %c0_i32_0 = arith.constant 0 : i32
    return %c0_i32, %arg1 : i32, i32
  }
  func.func @transform_3(%arg0: i32, %arg1: i32, %arg2: i32) -> (i32, i32) {
    %c0_i32 = arith.constant 0 : i32
    return %arg0, %arg1 : i32, i32
  }
}

</mosaic_0001>

<bundles_post_ra>
// kernel: tpu_custom_call.1
= control target key start
LH: loop header
LB: loop body
LE: loop exit
PB: predicated region body
PF: predicated region fallthrough
CT: control target
= control target key end

     0   :  { %8 = vsyncpa [#allocation4], 0  ;;  %s350_s0 = inlined_call_operand.hbm [shape: bf16[16,32], index: 0, kind: input, shape index: {}]   ;;  %s351_s1 = inlined_call_operand.hbm [shape: bf16[32,32], index: 1, kind: input, shape index: {}]   ;;  %s352_s2 = inlined_call_operand.vmem [shape: f32[1,32], index: 2, kind: input, shape index: {}]   ;;  %s353_s3 = inlined_call_operand.hbm [shape: bf16[16,32], index: 3, kind: output, shape index: {}]  }
   0x1   :  { %9 = vsyncpa [#allocation7], 0 }
   0x2   :  { %10 = vsyncpa [#allocation5], 0  ;;  %s270_s12 = smov [#allocation3]   ;;  %s198_s16 = scalar_lea.hbm %s350_s0, 128 }
   0x3   :  { %s16_s13 = sshll.u32 %s270_s12, 4  ;;  %p199_p0 = scmp.ne.s32.totalorder %s350_s0, %s198_s16  ;;  %s17_s13 = int_to_ptr.vmem [resolvable:$true] %s16_s13 }
   0x4   :  { %p202_p1 = scmp.lt.u32.totalorder %s198_s16, %s350_s0 }
   0x6   :  { %p204_p2 = pnand %p202_p1, %p199_p0 }
   0x8   :  { %207 = shalt.err (!%p204_p2)
}
   0x9   :  { %s208_s21 = scalar_lea.vmem %s17_s13, 128  ;;  %p213_p4 = scmp.lt.s32.totalorder %s17_s13, %s17_s13 }
   0xa   :  { %p209_p3 = scmp.ne.s32.totalorder %s17_s13, %s208_s21  ;;  %p214_p5 = scmp.lt.s32.totalorder %s208_s21, %s208_s21 }
   0xc   :  { %p215_p6 = por %p214_p5, %p213_p4 }
   0xe   :  { %p216_p7 = pnand %p215_p6, %p209_p3 }
  0x10   :  { %219 = shalt.err (!%p216_p7)
}
  0x11   :  { %s271_s22 = smov 64   ;;  %s272_s23 = smov 4  }
  0x12   :  { %22 = dma.hbm_to_vmem [thread:$0]  %s350_s0, 128, %s17_s13, [#allocation4], %s271_s22, %s271_s22, %s272_s23  }
  0x13   :  { %s273_s26 = smov [#allocation6]   ;;  %s220_s30 = scalar_lea.hbm %s351_s1, 256 }
  0x14   :  { %s28_s27 = sshll.u32 %s273_s26, 4  ;;  %p221_p8 = scmp.ne.s32.totalorder %s351_s1, %s220_s30  ;;  %s29_s27 = int_to_ptr.vmem [resolvable:$true] %s28_s27 }
  0x15   :  { %p224_p9 = scmp.lt.u32.totalorder %s220_s30, %s351_s1 }
  0x17   :  { %p226_p10 = pnand %p224_p9, %p221_p8 }
  0x19   :  { %229 = shalt.err (!%p226_p10)
}
  0x1a   :  { %s230_s8 = scalar_lea.vmem %s29_s27, 256  ;;  %p235_p12 = scmp.lt.s32.totalorder %s29_s27, %s29_s27 }
  0x1b   :  { %p231_p11 = scmp.ne.s32.totalorder %s29_s27, %s230_s8  ;;  %p236_p13 = scmp.lt.s32.totalorder %s230_s8, %s230_s8 }
  0x1d   :  { %p237_p0 = por %p236_p13, %p235_p12 }
  0x1f   :  { %p238_p1 = pnand %p237_p0, %p231_p11 }
  0x21   :  { %241 = shalt.err (!%p238_p1)
}
  0x22   :  { %34 = dma.hbm_to_vmem [thread:$0]  %s351_s1, 256, %s29_s27, [#allocation7], %s271_s22, %s271_s22, %s272_s23  }
  0x23   :  { %264 = dma.done.wait [#allocation4], 128  }
  0x24   :  { %265 = vsyncadd [#allocation4], 4294967168 }
  0x25   :  { %266 = dma.done.wait [#allocation7], 256  }
  0x26   :  { %267 = vsyncadd [#allocation7], 4294967040  ;;  %vm48_vm0 = vcmask 261120   ;;  %v274_v0 = vmov 0.0   ;;  %vm275_vm1 = vmmov 0   ;;  %v195_v1 = vld [vmem:[#allocation6] sm:$0xff]  }
  0x27   :  { %180 = vmatprep.subr.bf16.mxu0 %v274_v0  ;;  %184 = vmatprep.mubr.msk.bf16.mxu0 %vm275_vm1, %v274_v0  ;;  %49 = vst.msk [vmem:[#allocation2] sm:$0xff] %vm48_vm0, %v274_v0  ;;  %50 = vst.msk [vmem:[#allocation2 + $0x8] sm:$0xff] %vm48_vm0, %v274_v0  ;;  %v196_v2 = vld [vmem:[#allocation6 + $0x8] sm:$0xff]   ;;  %v197_v3 = vld [vmem:[#allocation3] sm:$0xff]   ;;  %vm147_vm2 = vcmask 257024   ;;  %s276_s11 = smov [#allocation8]  }
  0x28   :  { %181 = vmatpush3.bf16.msra.mxu0 %v195_v1  ;;  %v172_v12 = vld [vmem:[%s352_s2] ss:$0 sm:$0xff]  ;;  %s155_s12 = sshll.u32 %s276_s11, 4  ;;  %s156_s12 = int_to_ptr.vmem [resolvable:$true] %s155_s12 }
  0x29   :  { %182 = vmatprep.subr.bf16.mxu0 %v274_v0  ;;  %s242_s13 = scalar_lea.vmem %s156_s12, 128  ;;  %p247_p3 = scmp.lt.s32.totalorder %s156_s12, %s156_s12 }
  0x2a   :  { %p243_p2 = scmp.ne.s32.totalorder %s156_s12, %s242_s13  ;;  %p248_p4 = scmp.lt.s32.totalorder %s242_s13, %s242_s13 }
  0x2c   :  { %183 = vmatpush3.bf16.msra.mxu0 %v196_v2  ;;  %p249_p5 = por %p248_p4, %p247_p3 }
  0x2e   :  { %v51_v4 = vld [vmem:[#allocation2] sm:$0xff]  ;;  %v52_v6 = vld [vmem:[#allocation2 + $0x8] sm:$0xff]  ;;  %p250_p6 = pnand %p249_p5, %p243_p2 }
  0x2f   :  { %185 = vmatmul.mubr.msk.bf16.vlgmr.msra.gmra.mrb[0].mxu0 %vm48_vm0, %v197_v3 }
 0x102   :  { %v114_v5 = vpop.f32.mrb[0].mxu0 }
 0x103   :  { %v121_v7 = vadd.f32 %v114_v5, %v51_v4  ;;  %v186_v8 = vpop.f32.mrb[1].mxu0 }
 0x104   :  { %v117_v9 = vpop.f32.mrb[2].mxu0 }
 0x105   :  { %123 = vst.msk [vmem:[#allocation2] sm:$0xff] %vm48_vm0, %v121_v7  ;;  %v122_v10 = vadd.f32 %v117_v9, %v52_v6  ;;  %v187_v11 = vpop.f32.mrb[3].mxu0 }
 0x107   :  { %124 = vst.msk [vmem:[#allocation2 + $0x8] sm:$0xff] %vm48_vm0, %v122_v10 }
 0x10c   :  { %v128_v13 = vld [vmem:[#allocation2] sm:$0xff] }
 0x10d   :  { %v137_v14 = vadd.f32 %v172_v12, %v128_v13 }
 0x10e   :  { %v129_v15 = vld [vmem:[#allocation2 + $0x8] sm:$0xff] }
 0x10f   :  { %v138_v16 = vadd.f32 %v172_v12, %v129_v15  ;;  %v175_v17 = vpack.c.bf16 %v137_v14, %v137_v14 }
 0x111   :  { %v176_v18 = vpack.c.bf16 %v138_v16, %v138_v16  ;;  %148 = vst.msk [vmem:[#allocation8] sm:$0xf] %vm147_vm2, %v175_v17 }
 0x113   :  { %149 = vst.msk [vmem:[#allocation8 + $0x4] sm:$0xf] %vm147_vm2, %v176_v18 }
 0x114   :  { %253 = shalt.err (!%p250_p6)
}
 0x115   :  { %s254_s15 = scalar_lea.hbm %s353_s3, 128 }
 0x116   :  { %p255_p7 = scmp.ne.s32.totalorder %s353_s3, %s254_s15  ;;  %p258_p8 = scmp.lt.u32.totalorder %s254_s15, %s353_s3 }
 0x118   :  { %p260_p9 = pnand %p258_p8, %p255_p7 }
 0x11a   :  { %263 = shalt.err (!%p260_p9)
}
 0x11b   :  { %161 = dma.vmem_to_hbm [thread:$0]  %s156_s12, 128, %s353_s3, [#allocation5], %s271_s22, %s271_s22, %s272_s23  }
 0x11c   :  { %268 = dma.done.wait [#allocation5], 128  }
 0x11d   :  { %269 = vsyncadd [#allocation5], 4294967168 }
 0x11e   :  { %165 = vsyncpa [#allocation4], 1 }
 0x11f   :  { %166 = vsyncpa [#allocation7], 1 }
 0x120   :  { %167 = vsyncpa [#allocation5], 1 }

</bundles_post_ra>
